<compile_context>
chip_gen: v7x
topology: tpu7x:2x2x1
jax: 0.10.0
libtpu: 0.0.40
codegen_flags: <defaults>
</compile_context>

<pallas_src>
import jax
import jax.numpy as jnp
import numpy as np
from jax.experimental import pallas as pl
from jax.experimental.pallas import tpu as pltpu

# ---------------- configuration (small, consistent with the module) ----------------
N = 8              # batch size (number of (ges, drug) pairs)
GENE_DIM = 32      # args.gene_dim
DRUG_DIM = 32      # drug representation dim
ENC_INTLDIM = 32   # args.enc_intldim (enc_nlayers = 2 -> one hidden layer)
DC_INTLDIM = 32    # args.dc_intldim  (dc_nlayers = 1 -> one hidden layer)
ENC_HIDDIM = 32    # args.enc_hiddim
TEMPERATURE = 0.5  # args.temperature
LN_EPS = 1e-5      # PyTorch LayerNorm default eps
NORM_EPS = 1e-12   # F.normalize default eps

INTL = ENC_INTLDIM
HID = ENC_HIDDIM
assert GENE_DIM == DRUG_DIM == ENC_INTLDIM == DC_INTLDIM == ENC_HIDDIM == 32, \
    "compact (., 32) parameter-slab layout assumes equal 32-wide dims"

# Parameter-slab layout: all row offsets are multiples of 8 (sublane aligned),
# all blocks are 32 columns wide, so the kernel never needs lane-offset slices.
# (Widening to a lane-dense 128-col slab was reviewed as marginal at this size.)
SLAB_W = 32
R_W1G = 0                       # (GENE_DIM, INTL)  ges encoder linear 1
R_W1D = R_W1G + GENE_DIM        # (DRUG_DIM, INTL)  dc  encoder linear 1
R_W2G = R_W1D + DRUG_DIM        # (INTL, HID)       ges linear2 ∘ projhead (folded)
R_W2D = R_W2G + INTL            # (INTL, HID)       dc  linear2 ∘ projhead (folded)
R_VEC = R_W2D + INTL            # 8 rows of per-feature vectors (see pack_params)
SLAB_ROWS = R_VEC + 8           # 136

OUT_W = 128                     # lane-dense output width
COL_GES = 0
COL_DC = HID
COL_LOSS_GES = 2 * HID          # 64
COL_LOSS_DC = 2 * HID + 8       # 72


# ---------------- fused SimCLRPair forward kernel ----------------
def simclr_pair_kernel(ges_ref, drug_ref, p_ref, out_ref):
    xg = ges_ref[...]                                    # (N, GENE_DIM)
    xd = drug_ref[...]                                   # (N, DRUG_DIM)

    # Static, sublane-aligned parameter ref slices — only the needed loads issue.
    w1g = p_ref[R_W1G:R_W1G + GENE_DIM, :]               # (GENE_DIM, INTL)
    w1d = p_ref[R_W1D:R_W1D + DRUG_DIM, :]               # (DRUG_DIM, INTL)
    w2g = p_ref[R_W2G:R_W2G + INTL, :]                   # (INTL, HID)  folded
    w2d = p_ref[R_W2D:R_W2D + INTL, :]                   # (INTL, HID)  folded
    gb1 = p_ref[R_VEC + 0:R_VEC + 1, :]                  # (1, INTL)
    db1 = p_ref[R_VEC + 1:R_VEC + 2, :]
    glng = p_ref[R_VEC + 2:R_VEC + 3, :]
    dlng = p_ref[R_VEC + 3:R_VEC + 4, :]
    glnb = p_ref[R_VEC + 4:R_VEC + 5, :]
    dlnb = p_ref[R_VEC + 5:R_VEC + 6, :]
    gb2 = p_ref[R_VEC + 6:R_VEC + 7, :]                  # (1, HID)  folded bias
    db2 = p_ref[R_VEC + 7:R_VEC + 8, :]

    def encode(x, w1, b1, g, bt, w2, b2):
        # MLPLN branch: Linear -> LayerNorm -> SiLU -> (Dropout = id) -> Linear,
        # with the linear projection head folded into the second Linear,
        # followed by F.normalize.
        h = jnp.dot(x, w1, preferred_element_type=jnp.float32) + b1
        mu = jnp.mean(h, axis=-1, keepdims=True)
        var = jnp.mean((h - mu) ** 2, axis=-1, keepdims=True)
        h = (h - mu) * jax.lax.rsqrt(var + LN_EPS) * g + bt
        h = h * jax.nn.sigmoid(h)                        # SiLU
        y = jnp.dot(h, w2, preferred_element_type=jnp.float32) + b2
        # F.normalize via a single rsqrt on the clamped squared norm
        # (clamp at NORM_EPS**2; differs from F.normalize only for ~zero vectors).
        ss = jnp.sum(y * y, axis=-1, keepdims=True)
        return y * jax.lax.rsqrt(jnp.maximum(ss, NORM_EPS * NORM_EPS))

    ges_lat = encode(xg, w1g, gb1, glng, glnb, w2g, gb2)     # (N, HID)
    dc_lat = encode(xd, w1d, db1, dlng, dlnb, w2d, db2)      # (N, HID)

    # ----- contrastive similarities: single matmul, l_dc = l_ges.T -----
    l = jax.lax.dot_general(ges_lat, dc_lat, (((1,), (1,)), ((), ())),
                            preferred_element_type=jnp.float32) / TEMPERATURE   # (N, N)

    row = jax.lax.broadcasted_iota(jnp.int32, (N, N), 0)
    col = jax.lax.broadcasted_iota(jnp.int32, (N, N), 1)
    is_diag = row == col

    diag = jnp.sum(jnp.where(is_diag, l, 0.0), axis=1, keepdims=True)           # (N, 1)
    exp_off = jnp.where(is_diag, 0.0, jnp.exp(l))                               # exp() once
    denom_ges = jnp.sum(exp_off, axis=1, keepdims=True)                         # row sums
    # Column sums via an (8,8) transpose; XLU slot has slack here (perf review:
    # switch to an axis-0 reduce only if a bundle dump shows this on crit path).
    denom_dc = jnp.sum(exp_off.T, axis=1, keepdims=True)

    # -log(exp(diag)/denom) == log(denom) - diag
    loss_ges = jnp.log(denom_ges) - diag                                        # (N, 1)
    loss_dc = jnp.log(denom_dc) - diag                                          # (N, 1)

    # ----- single lane-dense (N, 128) unmasked output store -----
    loss_blk = jnp.concatenate(
        [jnp.broadcast_to(loss_ges, (N, 8)), jnp.broadcast_to(loss_dc, (N, 8))], axis=1)
    pad = jnp.zeros((N, OUT_W - 2 * HID - 16), jnp.float32)                     # (N, 48)
    out_ref[...] = jnp.concatenate([ges_lat, dc_lat, loss_blk, pad], axis=1)    # (N, 128)


# ---------------- one-time parameter packing (hoisted out of the hot path) ----------------
def pack_params(params):
    """Run once at param-load time, NOT per forward call."""
    (gw1, gb1, glng, glnb, gw2, gb2, gpw, gpb,
     dw1, db1, dlng, dlnb, dw2, db2, dpw, dpb) = params

    # Fold the linear projection heads into the second encoder linears (no
    # nonlinearity in between) — fp re-association only, within 1e-3 of PyTorch.
    wg2 = gw2 @ gpw                      # (INTL, HID)
    bg2 = gb2 @ gpw + gpb                # (1, HID)
    wd2 = dw2 @ dpw
    bd2 = db2 @ dpw + dpb

    vec = jnp.concatenate([gb1, db1, glng, dlng, glnb, dlnb, bg2, bd2], axis=0)  # (8, 32)
    P = jnp.concatenate([gw1, dw1, wg2, wd2, vec], axis=0).astype(jnp.float32)   # (136, 32)
    assert P.shape == (SLAB_ROWS, SLAB_W)
    return P


# ---------------- hot-path wrapper: one pallas_call + output unpacking ----------------
def simclr_pair_forward(diff_ges, drug_repr, packed_params):
    flops = 2 * (N * GENE_DIM * INTL + N * DRUG_DIM * INTL
                 + 2 * N * INTL * HID + N * HID * N)
    transcendentals = 2 * N * INTL + 4 * N + N * N + 2 * N
    bytes_accessed = 4 * (N * GENE_DIM + N * DRUG_DIM + SLAB_ROWS * SLAB_W + N * OUT_W)

    out = pl.pallas_call(
        simclr_pair_kernel,
        out_shape=jax.ShapeDtypeStruct((N, OUT_W), jnp.float32),
        in_specs=[pl.BlockSpec(memory_space=pltpu.MemorySpace.VMEM)] * 3,
        out_specs=pl.BlockSpec(memory_space=pltpu.MemorySpace.VMEM),
        cost_estimate=pl.CostEstimate(flops=flops,
                                      transcendentals=transcendentals,
                                      bytes_accessed=bytes_accessed),
    )(diff_ges.astype(jnp.float32), drug_repr.astype(jnp.float32), packed_params)

    ges_lat = out[:, COL_GES:COL_GES + HID]
    dc_lat = out[:, COL_DC:COL_DC + HID]
    loss_ges = out[:, COL_LOSS_GES]
    loss_dc = out[:, COL_LOSS_DC]
    return loss_ges, loss_dc, ges_lat, dc_lat


# ---------------- pure-JAX reference (mirrors the PyTorch forward, unfused) ----------------
def reference_forward(diff_ges, drug_repr, params):
    (gw1, gb1, glng, glnb, gw2, gb2, gpw, gpb,
     dw1, db1, dlng, dlnb, dw2, db2, dpw, dpb) = params

    def lin(x, w, b): return x @ w + b
    def ln(x, g, b):
        mu = x.mean(-1, keepdims=True)
        var = ((x - mu) ** 2).mean(-1, keepdims=True)
        return (x - mu) / jnp.sqrt(var + LN_EPS) * g + b
    def silu(x): return x * jax.nn.sigmoid(x)
    def l2n(x): return x / jnp.maximum(jnp.linalg.norm(x, axis=-1, keepdims=True), NORM_EPS)

    ges_emb = lin(silu(ln(lin(diff_ges, gw1, gb1), glng, glnb)), gw2, gb2)
    ges_lat = l2n(lin(ges_emb, gpw, gpb))
    dc_emb = lin(silu(ln(lin(drug_repr, dw1, db1), dlng, dlnb)), dw2, db2)
    dc_lat = l2n(lin(dc_emb, dpw, dpb))

    l_ges = ges_lat @ dc_lat.T / TEMPERATURE
    l_dc = dc_lat @ ges_lat.T / TEMPERATURE
    posmask = 1.0 - jnp.eye(N)
    loss_ges = -jnp.log(jnp.exp(jnp.diagonal(l_ges)) / (jnp.exp(l_ges) * posmask).sum(1))
    loss_dc = -jnp.log(jnp.exp(jnp.diagonal(l_dc)) / (jnp.exp(l_dc) * posmask).sum(1))
    return loss_ges, loss_dc, ges_lat, dc_lat


# ---------------- deterministic parameter init ----------------
def init_params(key):
    def w(key, shape, scale=0.1):
        return (scale * jax.random.normal(key, shape)).astype(jnp.float32)

    ks = jax.random.split(key, 16)
    params = (
        # ges_encoder: [GENE_DIM, ENC_INTLDIM, ENC_HIDDIM]
        w(ks[0], (GENE_DIM, ENC_INTLDIM)), w(ks[1], (1, ENC_INTLDIM)),
        jnp.ones((1, ENC_INTLDIM), jnp.float32), jnp.zeros((1, ENC_INTLDIM), jnp.float32),
        w(ks[2], (ENC_INTLDIM, ENC_HIDDIM)), w(ks[3], (1, ENC_HIDDIM)),
        # ges_projhead (linear): [ENC_HIDDIM, ENC_HIDDIM]
        w(ks[4], (ENC_HIDDIM, ENC_HIDDIM)), w(ks[5], (1, ENC_HIDDIM)),
        # dc_encoder: [DRUG_DIM, DC_INTLDIM, ENC_HIDDIM]
        w(ks[6], (DRUG_DIM, DC_INTLDIM)), w(ks[7], (1, DC_INTLDIM)),
        jnp.ones((1, DC_INTLDIM), jnp.float32), jnp.zeros((1, DC_INTLDIM), jnp.float32),
        w(ks[8], (DC_INTLDIM, ENC_HIDDIM)), w(ks[9], (1, ENC_HIDDIM)),
        # dc_projhead (linear): [ENC_HIDDIM, ENC_HIDDIM]
        w(ks[10], (ENC_HIDDIM, ENC_HIDDIM)), w(ks[11], (1, ENC_HIDDIM)),
    )
    return params


if __name__ == "__main__":
    key = jax.random.PRNGKey(0)
    k_data, k_drug, k_params = jax.random.split(key, 3)

    diff_ges = jax.random.normal(k_data, (N, GENE_DIM), dtype=jnp.float32)
    # In PyTorch, drug reprs are gathered from drug_repr_dict and concatenated; here
    # the gathered batch is built directly as a (N, DRUG_DIM) float32 tensor.
    drug_repr = jax.random.normal(k_drug, (N, DRUG_DIM), dtype=jnp.float32)
    params = init_params(k_params)

    # One-time parameter packing (param-load time), NOT part of the hot path.
    packed_P = jax.block_until_ready(pack_params(params))

    fwd = jax.jit(simclr_pair_forward)
    loss_ges, loss_dc, ges_lat, dc_lat = fwd(diff_ges, drug_repr, packed_P)
    jax.block_until_ready((loss_ges, loss_dc, ges_lat, dc_lat))

    # sanity check vs pure-JAX reference
    ref = reference_forward(diff_ges, drug_repr, params)
    for got, want in zip((loss_ges, loss_dc, ges_lat, dc_lat), ref):
        np.testing.assert_allclose(np.asarray(got), np.asarray(want), rtol=1e-3, atol=1e-3)

    print("KERNEL_OK")
</pallas_src>

<mosaic_0001>
module attributes {stable_mosaic.version = 11 : i64} {
  func.func @simclr_pair_kernel(%arg0: memref<8x32xf32, #tpu.memory_space<vmem>>, %arg1: memref<8x32xf32, #tpu.memory_space<vmem>>, %arg2: memref<136x32xf32, #tpu.memory_space<vmem>>, %arg3: memref<8x128xf32, #tpu.memory_space<vmem>>) attributes {dimension_semantics = [], scalar_prefetch = 0 : i64, scratch_operands = 0 : i64, tpu.core_type = #tpu.core_type<tc>} {
    %c0 = arith.constant 0 : index
    %c0_0 = arith.constant 0 : index
    %0 = vector.load %arg0[%c0, %c0_0] : memref<8x32xf32, #tpu.memory_space<vmem>>, vector<8x32xf32>
    %c0_1 = arith.constant 0 : index
    %c0_2 = arith.constant 0 : index
    %1 = vector.load %arg1[%c0_1, %c0_2] : memref<8x32xf32, #tpu.memory_space<vmem>>, vector<8x32xf32>
    %c0_3 = arith.constant 0 : index
    %c0_4 = arith.constant 0 : index
    %2 = vector.load %arg2[%c0_3, %c0_4] : memref<136x32xf32, #tpu.memory_space<vmem>>, vector<32x32xf32>
    %c32 = arith.constant 32 : index
    %c0_5 = arith.constant 0 : index
    %3 = vector.load %arg2[%c32, %c0_5] : memref<136x32xf32, #tpu.memory_space<vmem>>, vector<32x32xf32>
    %c64 = arith.constant 64 : index
    %c0_6 = arith.constant 0 : index
    %4 = vector.load %arg2[%c64, %c0_6] : memref<136x32xf32, #tpu.memory_space<vmem>>, vector<32x32xf32>
    %c96 = arith.constant 96 : index
    %c0_7 = arith.constant 0 : index
    %5 = vector.load %arg2[%c96, %c0_7] : memref<136x32xf32, #tpu.memory_space<vmem>>, vector<32x32xf32>
    %c128 = arith.constant 128 : index
    %c0_8 = arith.constant 0 : index
    %6 = vector.load %arg2[%c128, %c0_8] : memref<136x32xf32, #tpu.memory_space<vmem>>, vector<1x32xf32>
    %c129 = arith.constant 129 : index
    %c0_9 = arith.constant 0 : index
    %7 = vector.load %arg2[%c129, %c0_9] : memref<136x32xf32, #tpu.memory_space<vmem>>, vector<1x32xf32>
    %c130 = arith.constant 130 : index
    %c0_10 = arith.constant 0 : index
    %8 = vector.load %arg2[%c130, %c0_10] : memref<136x32xf32, #tpu.memory_space<vmem>>, vector<1x32xf32>
    %c131 = arith.constant 131 : index
    %c0_11 = arith.constant 0 : index
    %9 = vector.load %arg2[%c131, %c0_11] : memref<136x32xf32, #tpu.memory_space<vmem>>, vector<1x32xf32>
    %c132 = arith.constant 132 : index
    %c0_12 = arith.constant 0 : index
    %10 = vector.load %arg2[%c132, %c0_12] : memref<136x32xf32, #tpu.memory_space<vmem>>, vector<1x32xf32>
    %c133 = arith.constant 133 : index
    %c0_13 = arith.constant 0 : index
    %11 = vector.load %arg2[%c133, %c0_13] : memref<136x32xf32, #tpu.memory_space<vmem>>, vector<1x32xf32>
    %c134 = arith.constant 134 : index
    %c0_14 = arith.constant 0 : index
    %12 = vector.load %arg2[%c134, %c0_14] : memref<136x32xf32, #tpu.memory_space<vmem>>, vector<1x32xf32>
    %c135 = arith.constant 135 : index
    %c0_15 = arith.constant 0 : index
    %13 = vector.load %arg2[%c135, %c0_15] : memref<136x32xf32, #tpu.memory_space<vmem>>, vector<1x32xf32>
    %cst = arith.constant dense<0.000000e+00> : vector<8x32xf32>
    %14 = tpu.matmul %0, %2, %cst {dimension_numbers = #tpu.dot_dimension_numbers<[1], [0], [0], [1], [0, 0, 1, 1], [], []>} : vector<8x32xf32>, vector<32x32xf32>, vector<8x32xf32> -> vector<8x32xf32>
    %15 = vector.broadcast %6 : vector<1x32xf32> to vector<8x32xf32>
    %16 = arith.addf %14, %15 : vector<8x32xf32>
    %cst_16 = arith.constant dense<0.000000e+00> : vector<8xf32>
    %17 = vector.multi_reduction <add>, %16, %cst_16 [1] : vector<8x32xf32> to vector<8xf32>
    %18 = vector.shape_cast %17 : vector<8xf32> to vector<8x1xf32>
    %cst_17 = arith.constant 3.200000e+01 : f32
    %19 = vector.broadcast %cst_17 : f32 to vector<8x1xf32>
    %20 = arith.divf %18, %19 : vector<8x1xf32>
    %21 = vector.broadcast %20 : vector<8x1xf32> to vector<8x32xf32>
    %22 = arith.subf %16, %21 : vector<8x32xf32>
    %23 = arith.mulf %22, %22 : vector<8x32xf32>
    %cst_18 = arith.constant dense<0.000000e+00> : vector<8xf32>
    %24 = vector.multi_reduction <add>, %23, %cst_18 [1] : vector<8x32xf32> to vector<8xf32>
    %25 = vector.shape_cast %24 : vector<8xf32> to vector<8x1xf32>
    %cst_19 = arith.constant 3.200000e+01 : f32
    %26 = vector.broadcast %cst_19 : f32 to vector<8x1xf32>
    %27 = arith.divf %25, %26 : vector<8x1xf32>
    %28 = vector.broadcast %20 : vector<8x1xf32> to vector<8x32xf32>
    %29 = arith.subf %16, %28 : vector<8x32xf32>
    %cst_20 = arith.constant 9.99999974E-6 : f32
    %30 = vector.broadcast %cst_20 : f32 to vector<8x1xf32>
    %31 = arith.addf %27, %30 : vector<8x1xf32>
    %32 = math.rsqrt %31 : vector<8x1xf32>
    %33 = vector.broadcast %32 : vector<8x1xf32> to vector<8x32xf32>
    %34 = arith.mulf %29, %33 : vector<8x32xf32>
    %35 = vector.broadcast %8 : vector<1x32xf32> to vector<8x32xf32>
    %36 = arith.mulf %34, %35 : vector<8x32xf32>
    %37 = vector.broadcast %10 : vector<1x32xf32> to vector<8x32xf32>
    %38 = arith.addf %36, %37 : vector<8x32xf32>
    %39 = arith.negf %38 : vector<8x32xf32>
    %40 = math.exp %39 : vector<8x32xf32>
    %cst_21 = arith.constant 1.000000e+00 : f32
    %41 = vector.broadcast %cst_21 : f32 to vector<8x32xf32>
    %42 = arith.addf %41, %40 : vector<8x32xf32>
    %43 = arith.divf %41, %42 : vector<8x32xf32>
    %44 = arith.mulf %38, %43 : vector<8x32xf32>
    %cst_22 = arith.constant dense<0.000000e+00> : vector<8x32xf32>
    %45 = tpu.matmul %44, %4, %cst_22 {dimension_numbers = #tpu.dot_dimension_numbers<[1], [0], [0], [1], [0, 0, 1, 1], [], []>} : vector<8x32xf32>, vector<32x32xf32>, vector<8x32xf32> -> vector<8x32xf32>
    %46 = vector.broadcast %12 : vector<1x32xf32> to vector<8x32xf32>
    %47 = arith.addf %45, %46 : vector<8x32xf32>
    %48 = arith.mulf %47, %47 : vector<8x32xf32>
    %cst_23 = arith.constant dense<0.000000e+00> : vector<8xf32>
    %49 = vector.multi_reduction <add>, %48, %cst_23 [1] : vector<8x32xf32> to vector<8xf32>
    %50 = vector.shape_cast %49 : vector<8xf32> to vector<8x1xf32>
    %cst_24 = arith.constant 1.000000e-24 : f32
    %51 = vector.broadcast %cst_24 : f32 to vector<8x1xf32>
    %52 = arith.maximumf %50, %51 : vector<8x1xf32>
    %53 = math.rsqrt %52 : vector<8x1xf32>
    %54 = vector.broadcast %53 : vector<8x1xf32> to vector<8x32xf32>
    %55 = arith.mulf %47, %54 : vector<8x32xf32>
    %cst_25 = arith.constant dense<0.000000e+00> : vector<8x32xf32>
    %56 = tpu.matmul %1, %3, %cst_25 {dimension_numbers = #tpu.dot_dimension_numbers<[1], [0], [0], [1], [0, 0, 1, 1], [], []>} : vector<8x32xf32>, vector<32x32xf32>, vector<8x32xf32> -> vector<8x32xf32>
    %57 = vector.broadcast %7 : vector<1x32xf32> to vector<8x32xf32>
    %58 = arith.addf %56, %57 : vector<8x32xf32>
    %cst_26 = arith.constant dense<0.000000e+00> : vector<8xf32>
    %59 = vector.multi_reduction <add>, %58, %cst_26 [1] : vector<8x32xf32> to vector<8xf32>
    %60 = vector.shape_cast %59 : vector<8xf32> to vector<8x1xf32>
    %cst_27 = arith.constant 3.200000e+01 : f32
    %61 = vector.broadcast %cst_27 : f32 to vector<8x1xf32>
    %62 = arith.divf %60, %61 : vector<8x1xf32>
    %63 = vector.broadcast %62 : vector<8x1xf32> to vector<8x32xf32>
    %64 = arith.subf %58, %63 : vector<8x32xf32>
    %65 = arith.mulf %64, %64 : vector<8x32xf32>
    %cst_28 = arith.constant dense<0.000000e+00> : vector<8xf32>
    %66 = vector.multi_reduction <add>, %65, %cst_28 [1] : vector<8x32xf32> to vector<8xf32>
    %67 = vector.shape_cast %66 : vector<8xf32> to vector<8x1xf32>
    %cst_29 = arith.constant 3.200000e+01 : f32
    %68 = vector.broadcast %cst_29 : f32 to vector<8x1xf32>
    %69 = arith.divf %67, %68 : vector<8x1xf32>
    %70 = vector.broadcast %62 : vector<8x1xf32> to vector<8x32xf32>
    %71 = arith.subf %58, %70 : vector<8x32xf32>
    %cst_30 = arith.constant 9.99999974E-6 : f32
    %72 = vector.broadcast %cst_30 : f32 to vector<8x1xf32>
    %73 = arith.addf %69, %72 : vector<8x1xf32>
    %74 = math.rsqrt %73 : vector<8x1xf32>
    %75 = vector.broadcast %74 : vector<8x1xf32> to vector<8x32xf32>
    %76 = arith.mulf %71, %75 : vector<8x32xf32>
    %77 = vector.broadcast %9 : vector<1x32xf32> to vector<8x32xf32>
    %78 = arith.mulf %76, %77 : vector<8x32xf32>
    %79 = vector.broadcast %11 : vector<1x32xf32> to vector<8x32xf32>
    %80 = arith.addf %78, %79 : vector<8x32xf32>
    %81 = arith.negf %80 : vector<8x32xf32>
    %82 = math.exp %81 : vector<8x32xf32>
    %cst_31 = arith.constant 1.000000e+00 : f32
    %83 = vector.broadcast %cst_31 : f32 to vector<8x32xf32>
    %84 = arith.addf %83, %82 : vector<8x32xf32>
    %85 = arith.divf %83, %84 : vector<8x32xf32>
    %86 = arith.mulf %80, %85 : vector<8x32xf32>
    %cst_32 = arith.constant dense<0.000000e+00> : vector<8x32xf32>
    %87 = tpu.matmul %86, %5, %cst_32 {dimension_numbers = #tpu.dot_dimension_numbers<[1], [0], [0], [1], [0, 0, 1, 1], [], []>} : vector<8x32xf32>, vector<32x32xf32>, vector<8x32xf32> -> vector<8x32xf32>
    %88 = vector.broadcast %13 : vector<1x32xf32> to vector<8x32xf32>
    %89 = arith.addf %87, %88 : vector<8x32xf32>
    %90 = arith.mulf %89, %89 : vector<8x32xf32>
    %cst_33 = arith.constant dense<0.000000e+00> : vector<8xf32>
    %91 = vector.multi_reduction <add>, %90, %cst_33 [1] : vector<8x32xf32> to vector<8xf32>
    %92 = vector.shape_cast %91 : vector<8xf32> to vector<8x1xf32>
    %cst_34 = arith.constant 1.000000e-24 : f32
    %93 = vector.broadcast %cst_34 : f32 to vector<8x1xf32>
    %94 = arith.maximumf %92, %93 : vector<8x1xf32>
    %95 = math.rsqrt %94 : vector<8x1xf32>
    %96 = vector.broadcast %95 : vector<8x1xf32> to vector<8x32xf32>
    %97 = arith.mulf %89, %96 : vector<8x32xf32>
    %cst_35 = arith.constant dense<0.000000e+00> : vector<8x8xf32>
    %98 = tpu.matmul %55, %97, %cst_35 {dimension_numbers = #tpu.dot_dimension_numbers<[1], [1], [0], [0], [0, 0, 1, 0], [], []>} : vector<8x32xf32>, vector<8x32xf32>, vector<8x8xf32> -> vector<8x8xf32>
    %cst_36 = arith.constant 5.000000e-01 : f32
    %99 = vector.broadcast %cst_36 : f32 to vector<8x8xf32>
    %100 = arith.divf %98, %99 : vector<8x8xf32>
    %101 = tpu.iota {dimensions = array<i32: 0>} : vector<8x8xi32>
    %102 = tpu.iota {dimensions = array<i32: 1>} : vector<8x8xi32>
    %103 = arith.cmpi eq, %101, %102 : vector<8x8xi32>
    %cst_37 = arith.constant 0.000000e+00 : f32
    %104 = vector.broadcast %cst_37 : f32 to vector<8x8xf32>
    %105 = arith.select %103, %100, %104 : vector<8x8xi1>, vector<8x8xf32>
    %cst_38 = arith.constant dense<0.000000e+00> : vector<8xf32>
    %106 = vector.multi_reduction <add>, %105, %cst_38 [1] : vector<8x8xf32> to vector<8xf32>
    %107 = vector.shape_cast %106 : vector<8xf32> to vector<8x1xf32>
    %108 = math.exp %100 : vector<8x8xf32>
    %cst_39 = arith.constant 0.000000e+00 : f32
    %109 = vector.broadcast %cst_39 : f32 to vector<8x8xf32>
    %110 = arith.select %103, %109, %108 : vector<8x8xi1>, vector<8x8xf32>
    %cst_40 = arith.constant dense<0.000000e+00> : vector<8xf32>
    %111 = vector.multi_reduction <add>, %110, %cst_40 [1] : vector<8x8xf32> to vector<8xf32>
    %112 = vector.shape_cast %111 : vector<8xf32> to vector<8x1xf32>
    %113 = tpu.transpose %110, [1, 0] : vector<8x8xf32> -> vector<8x8xf32>
    %cst_41 = arith.constant dense<0.000000e+00> : vector<8xf32>
    %114 = vector.multi_reduction <add>, %113, %cst_41 [1] : vector<8x8xf32> to vector<8xf32>
    %115 = vector.shape_cast %114 : vector<8xf32> to vector<8x1xf32>
    %116 = math.log %112 : vector<8x1xf32>
    %117 = arith.subf %116, %107 : vector<8x1xf32>
    %118 = math.log %115 : vector<8x1xf32>
    %119 = arith.subf %118, %107 : vector<8x1xf32>
    %120 = vector.shape_cast %117 : vector<8x1xf32> to vector<8x1xf32>
    %121 = vector.broadcast %120 : vector<8x1xf32> to vector<8x8xf32>
    %122 = vector.shape_cast %119 : vector<8x1xf32> to vector<8x1xf32>
    %123 = vector.broadcast %122 : vector<8x1xf32> to vector<8x8xf32>
    %124 = tpu.concatenate %121, %123 in 1 : vector<8x8xf32>, vector<8x8xf32> -> vector<8x16xf32>
    %cst_42 = arith.constant 0.000000e+00 : f32
    %125 = vector.broadcast %cst_42 : f32 to vector<8x48xf32>
    %126 = tpu.concatenate %55, %97, %124, %125 in 1 : vector<8x32xf32>, vector<8x32xf32>, vector<8x16xf32>, vector<8x48xf32> -> vector<8x128xf32>
    %c0_43 = arith.constant 0 : index
    %c0_44 = arith.constant 0 : index
    %127 = vector.load %arg3[%c0_43, %c0_44] : memref<8x128xf32, #tpu.memory_space<vmem>>, vector<8x128xf32>
    tpu.vector_store %arg3[%c0_43, %c0_44], %126 {strides = array<i32>} : memref<8x128xf32, #tpu.memory_space<vmem>>, vector<8x128xf32>,
    return
  }
}

</mosaic_0001>

<bundles_post_ra>
// kernel: simclr_pair_forward.1
= control target key start
LH: loop header
LB: loop body
LE: loop exit
PB: predicated region body
PF: predicated region fallthrough
CT: control target
= control target key end

     0   :  { %v715_v0 = vmov 0.0|0.0   ;;  %vm716_vm0 = vmmov 0   ;;  %v717_v4 = vmov 0.0   ;;  %vm44_vm1 = vcmask 261120   ;;  %s719_s7 = smov 64   ;;  %s857_s2 = inlined_call_operand.vmem [shape: f32[136,32], index: 2, kind: input, shape index: {}]   ;;  %s858_s0 = inlined_call_operand.vmem [shape: f32[8,32], index: 0, kind: input, shape index: {}]   ;;  %s859_s1 = inlined_call_operand.vmem [shape: f32[8,32], index: 1, kind: input, shape index: {}]   ;;  %s860_s3 = inlined_call_operand.vmem [shape: f32[8,128], index: 3, kind: output, shape index: {}]  }
   0x1   :  { %664 = vmatprep.subr.bf16.mxu0 %v715_v0  ;;  %v16_v1 = vld [vmem:[%s857_s2] sm:$0xff]  ;;  %v17_v2 = vld [vmem:[%s857_s2 + $0x8] sm:$0xff]  ;;  %v18_v3 = vld [vmem:[%s857_s2 + $0x10] sm:$0xff]  ;;  %623 = vmatprep.mubr.msk.f32.mxu0 %vm716_vm0, %v717_v4  ;;  %vm508_vm3 = vcmask 64512   ;;  %vm568_vm4 = vcmask 523264   ;;  %vm570_vm5 = vcmask 654336  }
   0x2   :  { %v665_v5 = vpack.c.bf16 %v17_v2, %v16_v1  ;;  %v19_v6 = vld [vmem:[%s857_s2 + $0x18] sm:$0xff]  ;;  %670 = vmatprep.subr.bf16.mxu1 %v715_v0  ;;  %634 = vmatprep.mubr.msk.f32.mxu1 %vm716_vm0, %v717_v4  ;;  %v20_v8 = vld [vmem:[%s857_s2 + $0x20] sm:$0xff]  ;;  %v21_v9 = vld [vmem:[%s857_s2 + $0x28] sm:$0xff] }
   0x3   :  { %v668_v7 = vpack.c.bf16 %v19_v6, %v18_v3  ;;  %v14_v10 = vld [vmem:[%s858_s0] sm:$0xff]  ;;  %v677_v11 = vpack.c.bf16 %v21_v9, %v20_v8  ;;  %v22_v12 = vld [vmem:[%s857_s2 + $0x30] sm:$0xff]  ;;  %v23_v13 = vld [vmem:[%s857_s2 + $0x38] sm:$0xff] }
   0x4   :  { %666 = vmatpush3.bf16.msra.mxu0 %v665_v5  ;;  %v680_v14 = vpack.c.bf16 %v23_v13, %v22_v12  ;;  %v15_v15 = vld [vmem:[%s859_s1] sm:$0xff]  ;;  %v25_v37 = vld [vmem:[%s857_s2 + $0x48] sm:$0xff]  ;;  %v26_v38 = vld [vmem:[%s857_s2 + $0x50] sm:$0xff] }
   0x5   :  { %667 = vmatprep.subr.bf16.mxu0 %v715_v0  ;;  %v577_v16 = vld [vmem:[%s857_s2 + $0x80] ss:$0 sm:$0xff]  ;;  %v584_v21 = vld [vmem:[%s857_s2 + $0x81] ss:$0 sm:$0xff]  ;;  %v27_v40 = vld [vmem:[%s857_s2 + $0x58] sm:$0xff] }
   0x6   :  { %v24_v36 = vld [vmem:[%s857_s2 + $0x40] sm:$0xff]  ;;  %v674_v41 = vpack.c.bf16 %v27_v40, %v26_v38  ;;  %v29_v5 = vld [vmem:[%s857_s2 + $0x68] sm:$0xff]  ;;  %v30_v9 = vld [vmem:[%s857_s2 + $0x70] sm:$0xff] }
   0x7   :  { %v671_v39 = vpack.c.bf16 %v25_v37, %v24_v36  ;;  %v579_v49 = vld [vmem:[%s857_s2 + $0x82] ss:$0 sm:$0xff]  ;;  %v580_v51 = vld [vmem:[%s857_s2 + $0x84] ss:$0 sm:$0xff]  ;;  %v586_v56 = vld [vmem:[%s857_s2 + $0x83] ss:$0 sm:$0xff] }
   0x8   :  { %669 = vmatpush3.bf16.msra.mxu0 %v668_v7  ;;  %v587_v58 = vld [vmem:[%s857_s2 + $0x85] ss:$0 sm:$0xff] }
   0x9   :  { %676 = vmatprep.subr.bf16.mxu0 %v715_v0  ;;  %672 = vmatpush3.bf16.msra.mxu1 %v671_v39  ;;  %v28_v3 = vld [vmem:[%s857_s2 + $0x60] sm:$0xff] }
   0xa   :  { %673 = vmatprep.subr.bf16.mxu1 %v715_v0  ;;  %v683_v7 = vpack.c.bf16 %v29_v5, %v28_v3 }
   0xb   :  { %624 = vmatmul.mubr.msk.f32.vlgmr.msra.gmra.mrb[0].mxu0 %vm44_vm1, %v14_v10  ;;  %v31_v10 = vld [vmem:[%s857_s2 + $0x78] sm:$0xff] }
   0xc   :  { %678 = vmatpush3.bf16.msra.mxu0 %v677_v11  ;;  %645 = vmatprep.mubr.msk.f32.mxu0 %vm716_vm0, %v717_v4  ;;  %v686_v11 = vpack.c.bf16 %v31_v10, %v30_v9 }
   0xd   :  { %679 = vmatprep.subr.bf16.mxu0 %v715_v0  ;;  %675 = vmatpush3.bf16.msra.mxu1 %v674_v41 }
   0xe   :  { %682 = vmatprep.subr.bf16.mxu1 %v715_v0 }
  0x10   :  { %681 = vmatpush3.bf16.msra.mxu0 %v680_v14  ;;  %v582_v14 = vld [vmem:[%s857_s2 + $0x86] ss:$0 sm:$0xff] }
  0x11   :  { %659 = vmatprep.subr.mxu0 %v717_v4 }
  0x13   :  { %646 = vmatmul.mubr.msk.f32.vlgmr.msra.gmra.mrb[2].mxu0 %vm44_vm1, %v15_v15 }
  0x14   :  { %661 = vmatprep.mubr.msk.f32.mxu0 %vm716_vm0, %v717_v4 }
  0xde   :  { %v114_v17 = vpop.f32.mrb[0].mxu0 }
  0xdf   :  { %v115_v18 = vadd.f32 %v577_v16, %v114_v17  ;;  %v625_v19 = vpop.f32.mrb[1].mxu0 }
  0xe1   :  { %v118_v20 = vsel %vm44_vm1, %v115_v18, 0.0 }
  0xe2   :  { %119 = vadd.xlane.f32.xlu0 %v118_v20 }
  0xe6   :  { %v306_v22 = vpop.f32.mrb[2].mxu0 }
  0xe7   :  { %v307_v23 = vadd.f32 %v584_v21, %v306_v22  ;;  %v647_v24 = vpop.f32.mrb[3].mxu0 }
  0xe9   :  { %v310_v25 = vsel %vm44_vm1, %v307_v23, 0.0 }
  0xea   :  { %311 = vadd.xlane.f32.xlu0 %v310_v25 }
 0x16f   :  { %v120_v26 = vpop.xlane.xlu0 %119 }
 0x170   :  { %v122_v27 = vmul.f32 0.03125, %v120_v26 }
 0x172   :  { %v123_v28 = vsub.f32 %v115_v18, %v122_v27 }
 0x174   :  { %v124_v29 = vmul.f32 %v123_v28, %v123_v28 }
 0x176   :  { %v125_v30 = vsel %vm44_vm1, %v124_v29, 0.0 }
 0x177   :  { %126 = vadd.xlane.f32.xlu1 %v125_v30  ;;  %v312_v31 = vpop.xlane.xlu0 %311 }
 0x178   :  { %v313_v32 = vmul.f32 0.03125, %v312_v31 }
 0x17a   :  { %v314_v33 = vsub.f32 %v307_v23, %v313_v32  ;;  %v502_v32 = vlaneseq }
 0x17c   :  { %v315_v34 = vmul.f32 %v314_v33, %v314_v33 }
 0x17e   :  { %v316_v35 = vsel %vm44_vm1, %v315_v34, 0.0  ;;  %v505_v34 = vand.u32 127, %v502_v32 }
 0x17f   :  { %317 = vadd.xlane.f32.xlu1 %v316_v35 }
 0x204   :  { %v127_v42 = vpop.xlane.xlu1 %126 }
 0x205   :  { %v128_v43 = vmul.f32 0.03125, %v127_v42 }
 0x207   :  { %v129_v44 = vadd.f32 1e-05, %v128_v43 }
 0x209   :  { %693 = vrsqrt.f32 %v129_v44 }
 0x20c   :  { %v318_v45 = vpop.xlane.xlu1 %317 }
 0x20d   :  { %v319_v46 = vmul.f32 0.03125, %v318_v45 }
 0x20f   :  { %v320_v47 = vadd.f32 1e-05, %v319_v46 }
 0x211   :  { %695 = vrsqrt.f32 %v320_v47 }
 0x213   :  { %v694_v48 = vpop.eup %693 }
 0x214   :  { %v131_v50 = vmul.f32 %v694_v48, %v123_v28 }
 0x216   :  { %v136_v52 = vmul.f32 %v579_v49, %v131_v50 }
 0x218   :  { %v141_v53 = vadd.f32 %v580_v51, %v136_v52 }
 0x21a   :  { %v581_v54 = vmul.f32 -1.442695, %v141_v53 }
 0x21b   :  { %v696_v55 = vpop.eup %695 }
 0x21c   :  { %v322_v57 = vmul.f32 %v696_v55, %v314_v33  ;;  %697 = vpow2.f32 %v581_v54  ;;  %v503_v33 = vshrl.u32 %v502_v32, 7 }
 0x21e   :  { %v327_v59 = vmul.f32 %v586_v56, %v322_v57  ;;  %vm506_vm2 = vcmp.eq.s32.totalorder %v503_v33, %v505_v34 }
 0x220   :  { %v332_v60 = vadd.f32 %v587_v58, %v327_v59 }
 0x222   :  { %v588_v61 = vmul.f32 -1.442695, %v332_v60 }
 0x224   :  { %699 = vpow2.f32 %v588_v61 }
 0x226   :  { %v698_v62 = vpop.eup %697 }
 0x227   :  { %v145_v63 = vadd.f32 1.0, %v698_v62 }
 0x229   :  { %701 = vrcp.f32 %v145_v63 }
 0x22e   :  { %v700_v1 = vpop.eup %699 }
 0x22f   :  { %v336_v2 = vadd.f32 1.0, %v700_v1 }
 0x231   :  { %703 = vrcp.f32 %v336_v2 }
 0x233   :  { %v702_v6 = vpop.eup %701 }
 0x234   :  { %v148_v8 = vmul.f32 %v702_v6, %v141_v53 }
 0x236   :  { %635 = vmatmul.mubr.msk.f32.vlgmr.msra.gmra.mrb[0].mxu1 %vm44_vm1, %v148_v8 }
 0x237   :  { %684 = vmatpush3.bf16.msra.mxu1 %v683_v7  ;;  %656 = vmatprep.mubr.msk.f32.mxu1 %vm716_vm0, %v717_v4 }
 0x238   :  { %685 = vmatprep.subr.bf16.mxu1 %v715_v0  ;;  %v589_v0 = vld [vmem:[%s857_s2 + $0x87] ss:$0 sm:$0xff]  ;;  %s718_s2 = smov 32  }
 0x23b   :  { %v704_v12 = vpop.eup %703  ;;  %687 = vmatpush3.bf16.msra.mxu1 %v686_v11 }
 0x23c   :  { %v339_v13 = vmul.f32 %v704_v12, %v332_v60 }
 0x23e   :  { %657 = vmatmul.mubr.msk.f32.vlgmr.msra.gmra.mrb[2].mxu1 %vm44_vm1, %v339_v13 }
 0x309   :  { %v222_v15 = vpop.f32.mrb[0].mxu1 }
 0x30a   :  { %v223_v16 = vadd.f32 %v582_v14, %v222_v15  ;;  %v636_v17 = vpop.f32.mrb[1].mxu1 }
 0x30c   :  { %v226_v18 = vmul.f32 %v223_v16, %v223_v16 }
 0x30e   :  { %v227_v19 = vsel %vm44_vm1, %v226_v18, 0.0 }
 0x30f   :  { %228 = vadd.xlane.f32.xlu1 %v227_v19 }
 0x311   :  { %v413_v4 = vpop.f32.mrb[2].mxu1 }
 0x312   :  { %v414_v20 = vadd.f32 %v589_v0, %v413_v4  ;;  %v658_v21 = vpop.f32.mrb[3].mxu1 }
 0x314   :  { %v417_v22 = vmul.f32 %v414_v20, %v414_v20 }
 0x316   :  { %v418_v23 = vsel %vm44_vm1, %v417_v22, 0.0 }
 0x317   :  { %419 = vadd.xlane.f32.xlu0 %v418_v23 }
 0x39c   :  { %v229_v24 = vpop.xlane.xlu1 %228 }
 0x39d   :  { %v230_v25 = vmax.f32 %v229_v24, 1e-24 }
 0x3a4   :  { %v420_v26 = vpop.xlane.xlu0 %419 }
 0x3a5   :  { %v421_v27 = vmax.f32 %v420_v26, 1e-24 }
 0x3a7   :  { %705 = vrsqrt.f32 %v421_v27 }
 0x3a8   :  { %707 = vrsqrt.f32 %v230_v25 }
 0x3b1   :  { %v706_v28 = vpop.eup %705 }
 0x3b2   :  { %v708_v29 = vpop.eup %707  ;;  %v423_v30 = vmul.f32 %v706_v28, %v414_v20 }
 0x3b3   :  { %v232_v31 = vmul.f32 %v708_v29, %v223_v16 }
 0x3b4   :  { %660 = vmatpush3.xpose.msk.msra.mxu0 %vm44_vm1, %v423_v30 }
 0x3b7   :  { %662 = vmatmul.mubr.msk.f32.vlgmr.msra.gmra.mrb[4].mxu0 %vm44_vm1, %v232_v31 }
 0x48a   :  { %v496_v35 = vpop.f32.mrb[4].mxu0 }
 0x48b   :  { %v501_v36 = vmul.f32 2.0, %v496_v35  ;;  %v663_v37 = vpop.f32.mrb[5].mxu0 }
 0x48d   :  { %v512_v38 = vmul.f32 1.442695, %v501_v36  ;;  %v507_v39 = vsel %vm506_vm2, %v501_v36, 0.0 }
 0x48e   :  { %v509_v45 = vsel %vm508_vm3, %v507_v39, 0.0 }
 0x48f   :  { %709 = vpow2.f32 %v512_v38 }
 0x499   :  { %v710_v40 = vpop.eup %709 }
 0x49a   :  { %v514_v41 = vsel %vm506_vm2, 0.0, %v710_v40 }
 0x49b   :  { %518 = vxpose.xlu0.b32.start.end [1/1] (short) (narrow) %v514_v41, 8  ;;  %v515_v42 = vsel %vm508_vm3, %v514_v41, 0.0 }
 0x49c   :  { %516 = vadd.xlane.f32.xlu1 %v515_v42 }
 0x51b   :  { %v534_v43 = vpop.trf.xlu0 }
 0x51c   :  { %v550_v44 = vsel %vm508_vm3, %v534_v43, 0.0 }
 0x51d   :  { %551 = vadd.xlane.f32.xlu1 %v550_v44 }
 0x521   :  { %510 = vadd.xlane.f32.xlu1 %v509_v45 }
 0x529   :  { %v517_v46 = vpop.xlane.xlu1 %516 }
 0x52a   :  { %711 = vlog2.f32 %v517_v46 }
 0x532   :  { %560 = vrot.lane.b32.xlu1 %v423_v30, %s718_s2 }
 0x534   :  { %v712_v48 = vpop.eup %711 }
 0x535   :  { %v554_v51 = vmul.f32 0.6931472, %v712_v48 }
 0x5aa   :  { %v552_v47 = vpop.xlane.xlu1 %551 }
 0x5ab   :  { %713 = vlog2.f32 %v552_v47 }
 0x5ae   :  { %v511_v50 = vpop.xlane.xlu1 %510 }
 0x5af   :  { %v555_v53 = vsub.f32 %v554_v51, %v511_v50 }
 0x5b2   :  { %v561_v56 = vpop.permute.xlu1 %560 }
 0x5b3   :  { %v567_v57 = vsel %vm44_vm1, %v232_v31, %v561_v56 }
 0x5b5   :  { %v714_v49 = vpop.eup %713 }
 0x5b6   :  { %v557_v52 = vmul.f32 0.6931472, %v714_v49 }
 0x5b8   :  { %v558_v54 = vsub.f32 %v557_v52, %v511_v50 }
 0x5ba   :  { %v559_v55 = vsel %vm508_vm3, %v555_v53, %v558_v54 }
 0x5bb   :  { %564 = vrot.lane.b32.xlu1 %v559_v55, %s719_s7 }
 0x62d   :  { %v565_v58 = vpop.permute.xlu1 %564 }
 0x62e   :  { %v569_v59 = vsel %vm568_vm4, %v567_v57, %v565_v58 }
 0x62f   :  { %v571_v60 = vsel %vm570_vm5, %v569_v59, 0.0 }
 0x630   :  { %572 = vst [vmem:[%s860_s3] sm:$0xff] %v571_v60 }

</bundles_post_ra>
